<compile_context>
chip_gen: v7x
topology: tpu7x:2x2x1
jax: 0.10.0
libtpu: 0.0.40
codegen_flags: <defaults>
</compile_context>

<pallas_src>
import jax
import jax.numpy as jnp
from jax.experimental import pallas as pl
from jax.experimental.pallas import tpu as pltpu


def _add_kernel(x_ref, y_ref, o_ref):
    # Pure VPU elementwise add on the whole VMEM tile.
    o_ref[...] = x_ref[...] + y_ref[...]


_LANE = 128


def _chip_config():
    """Generation-aware block sizing (conservative fallback if unknown)."""
    kind = ""
    try:
        kind = jax.devices()[0].device_kind.lower()
    except Exception:
        pass
    if "v7" in kind:
        # 64 MiB physical VMEM, 2 TCs: bigger blocks, force a grid for >1 block,
        # raise the scoped-VMEM limit (3 arrays x 2 buffers x 4 MiB = 24 MiB).
        return {"target_block_bytes": 4 << 20,
                "single_block_max_bytes": 4 << 20,
                "vmem_limit_bytes": 48 << 20,
                "prefer_even_grid": True}
    if "v6" in kind:
        # 32 MiB scoped default: 2 MiB blocks are near the roofline knee.
        return {"target_block_bytes": 2 << 20,
                "single_block_max_bytes": 8 << 20,
                "vmem_limit_bytes": None,
                "prefer_even_grid": False}
    # v5e or unknown: 16 MiB scoped-VMEM default -> keep x+y+out <= 12 MiB.
    return {"target_block_bytes": 2 << 20,
            "single_block_max_bytes": 4 << 20,
            "vmem_limit_bytes": None,
            "prefer_even_grid": False}


def _sublane_pack(itemsize: int) -> int:
    # Min second-to-last-dim granularity: f32 -> 8, bf16 -> 16, int8/fp8 -> 32.
    return 8 * max(1, 4 // itemsize)


def _pick_width(total: int) -> int:
    # Widest lane-dense last dim that divides the (128-aligned) element count.
    for cand in (2048, 1024, 512, 256, 128):
        if total % cand == 0:
            return cand
    return _LANE  # unreachable when total is a multiple of 128


def _call_single_block(x2: jax.Array, y2: jax.Array) -> jax.Array:
    # Whole slab resident in VMEM, no grid, no pipeline prologue/epilogue.
    return pl.pallas_call(
        _add_kernel,
        out_shape=jax.ShapeDtypeStruct(x2.shape, x2.dtype),
    )(x2, y2)


def _call_tiled(x2: jax.Array, y2: jax.Array, tile_rows: int, grid_rows: int,
                vmem_limit_bytes) -> jax.Array:
    rows, width = x2.shape
    spec = pl.BlockSpec((tile_rows, width), lambda i: (i, 0))
    params = {"dimension_semantics": ("parallel",)}
    if vmem_limit_bytes is not None:
        params["vmem_limit_bytes"] = vmem_limit_bytes
    return pl.pallas_call(
        _add_kernel,
        out_shape=jax.ShapeDtypeStruct((rows, width), x2.dtype),
        grid=(grid_rows,),
        in_specs=[spec, spec],
        out_specs=spec,
        compiler_params=pltpu.CompilerParams(**params),
    )(x2, y2)


def pallas_add(x: jax.Array, y: jax.Array) -> jax.Array:
    """Elementwise add of two same-shaped arrays via a Pallas TPU kernel."""
    assert x.shape == y.shape, "torch.add broadcasting not needed for this test"
    assert x.dtype == y.dtype
    orig_shape = x.shape
    total = x.size
    if total == 0:
        return x + y  # degenerate, nothing to do

    cfg = _chip_config()
    itemsize = jnp.dtype(x.dtype).itemsize
    pack = _sublane_pack(itemsize)

    xf = x.reshape(-1)
    yf = y.reshape(-1)

    # 128-aligned prefix goes through the kernel; the <128-element tail (rare)
    # is added with plain XLA -- no whole-array pad, no output slice.
    aligned = (total // _LANE) * _LANE
    if aligned == 0:
        return (xf + yf).reshape(orig_shape)
    tail = total - aligned
    xa = xf if tail == 0 else xf[:aligned]
    ya = yf if tail == 0 else yf[:aligned]

    width = _pick_width(aligned)
    rows = aligned // width
    x2 = xa.reshape(rows, width)
    y2 = ya.reshape(rows, width)

    row_bytes = width * itemsize
    target_rows = max(pack, (cfg["target_block_bytes"] // row_bytes // pack) * pack)
    single_rows = max(pack, (cfg["single_block_max_bytes"] // row_bytes // pack) * pack)

    if rows <= single_rows:
        # Small input: single resident block (block == full dims, so the
        # (8,128) divisibility rule does not apply).
        out2 = _call_single_block(x2, y2)
    else:
        # Tiled path: blocks need not divide `rows`; the last (partial) block
        # is edge-masked by Pallas, so every input stays on the big-block path.
        tile_rows = target_rows
        grid_rows = -(-rows // tile_rows)
        if cfg["prefer_even_grid"] and grid_rows > 1 and grid_rows % 2 == 1:
            # Nudge tile_rows down so both v7x TensorCores get equal work.
            cand = -(-rows // (grid_rows + 1))
            cand = -(-cand // pack) * pack
            if cand >= pack and (-(-rows // cand)) % 2 == 0:
                tile_rows = cand
                grid_rows = -(-rows // cand)
        out2 = _call_tiled(x2, y2, tile_rows, grid_rows, cfg["vmem_limit_bytes"])

    if tail == 0:
        return out2.reshape(orig_shape)
    tail_out = xf[aligned:] + yf[aligned:]
    return jnp.concatenate([out2.reshape(-1), tail_out]).reshape(orig_shape)


if __name__ == "__main__":
    key = jax.random.PRNGKey(0)
    kx, ky = jax.random.split(key)

    # Small NCHW-style shapes consistent with the module's forward.
    x = jax.random.normal(kx, (2, 4, 16, 16), dtype=jnp.float32)
    y = jax.random.normal(ky, (2, 4, 16, 16), dtype=jnp.float32)

    out = jax.block_until_ready(pallas_add(x, y))
    ref = x + y
    assert out.shape == ref.shape
    assert out.dtype == ref.dtype
    assert jnp.allclose(out, ref, atol=1e-6, rtol=1e-6)

    # Exercise the tiled path (including an edge-masked partial last block)
    # at a still-small size to verify the grid/BlockSpec path on this chip.
    k1, k2 = jax.random.split(kx)
    a2 = jax.random.normal(k1, (40, 256), dtype=jnp.float32)
    b2 = jax.random.normal(k2, (40, 256), dtype=jnp.float32)
    t_out = jax.block_until_ready(
        _call_tiled(a2, b2, tile_rows=16, grid_rows=-(-40 // 16), vmem_limit_bytes=None))
    assert jnp.allclose(t_out, a2 + b2, atol=1e-6, rtol=1e-6)

    print("KERNEL_OK")
</pallas_src>

<mosaic_0001>
module attributes {stable_mosaic.version = 11 : i64} {
  func.func @_add_kernel(%arg0: memref<1x2048xf32, #tpu.memory_space<vmem>>, %arg1: memref<1x2048xf32, #tpu.memory_space<vmem>>, %arg2: memref<1x2048xf32, #tpu.memory_space<vmem>>) attributes {dimension_semantics = [], scalar_prefetch = 0 : i64, scratch_operands = 0 : i64, tpu.core_type = #tpu.core_type<tc>} {
    %c0 = arith.constant 0 : index
    %c0_0 = arith.constant 0 : index
    %0 = vector.load %arg0[%c0, %c0_0] : memref<1x2048xf32, #tpu.memory_space<vmem>>, vector<1x2048xf32>
    %c0_1 = arith.constant 0 : index
    %c0_2 = arith.constant 0 : index
    %1 = vector.load %arg1[%c0_1, %c0_2] : memref<1x2048xf32, #tpu.memory_space<vmem>>, vector<1x2048xf32>
    %2 = arith.addf %0, %1 : vector<1x2048xf32>
    %c0_3 = arith.constant 0 : index
    %c0_4 = arith.constant 0 : index
    %3 = vector.load %arg2[%c0_3, %c0_4] : memref<1x2048xf32, #tpu.memory_space<vmem>>, vector<1x2048xf32>
    tpu.vector_store %arg2[%c0_3, %c0_4], %2 {strides = array<i32>} : memref<1x2048xf32, #tpu.memory_space<vmem>>, vector<1x2048xf32>,
    return
  }
}

</mosaic_0001>

<bundles_post_ra>
// kernel: tpu_custom_call.1
= control target key start
LH: loop header
LB: loop body
LE: loop exit
PB: predicated region body
PF: predicated region fallthrough
CT: control target
= control target key end

     0   :  { %7 = vsyncpa [#allocation3], 0  ;;  %s189_s0 = inlined_call_operand.hbm [shape: f32[1,2048], index: 0, kind: input, shape index: {}]   ;;  %s190_s1 = inlined_call_operand.hbm [shape: f32[1,2048], index: 1, kind: input, shape index: {}]   ;;  %s191_s2 = inlined_call_operand.hbm [shape: f32[1,2048], index: 2, kind: output, shape index: {}]  }
   0x1   :  { %8 = vsyncpa [#allocation6], 0 }
   0x2   :  { %9 = vsyncpa [#allocation4], 0  ;;  %s135_s9 = smov [#allocation2]   ;;  %s136_s11 = smov [#allocation5]  }
   0x3   :  { %s16_s10 = sshll.u32 %s135_s9, 4  ;;  %s26_s12 = sshll.u32 %s136_s11, 4  ;;  %s17_s10 = int_to_ptr.vmem [resolvable:$true] %s16_s10  ;;  %s27_s12 = int_to_ptr.vmem [resolvable:$true] %s26_s12 }
   0x4   :  { %s63_s15 = scalar_lea.hbm %s189_s0, 256 }
   0x5   :  { %p64_p0 = scmp.ne.s32.totalorder %s189_s0, %s63_s15  ;;  %p67_p1 = scmp.lt.u32.totalorder %s63_s15, %s189_s0 }
   0x7   :  { %p69_p2 = pnand %p67_p1, %p64_p0 }
   0x9   :  { %72 = shalt.err (!%p69_p2)
}
   0xa   :  { %s73_s20 = scalar_lea.vmem %s17_s10, 256  ;;  %p78_p4 = scmp.lt.s32.totalorder %s17_s10, %s17_s10 }
   0xb   :  { %p74_p3 = scmp.ne.s32.totalorder %s17_s10, %s73_s20  ;;  %p79_p5 = scmp.lt.s32.totalorder %s73_s20, %s73_s20 }
   0xd   :  { %p80_p6 = por %p79_p5, %p78_p4 }
   0xf   :  { %p81_p7 = pnand %p80_p6, %p74_p3 }
  0x11   :  { %84 = shalt.err (!%p81_p7)
}
  0x12   :  { %19 = dma.hbm_to_vmem [thread:$0]  %s189_s0, 256, %s17_s10, [#allocation3]  }
  0x13   :  { %s85_s25 = scalar_lea.hbm %s190_s1, 256 }
  0x14   :  { %p86_p8 = scmp.ne.s32.totalorder %s190_s1, %s85_s25  ;;  %p89_p9 = scmp.lt.u32.totalorder %s85_s25, %s190_s1 }
  0x16   :  { %p91_p10 = pnand %p89_p9, %p86_p8 }
  0x18   :  { %94 = shalt.err (!%p91_p10)
}
  0x19   :  { %s95_s30 = scalar_lea.vmem %s27_s12, 256  ;;  %p100_p12 = scmp.lt.s32.totalorder %s27_s12, %s27_s12 }
  0x1a   :  { %p96_p11 = scmp.ne.s32.totalorder %s27_s12, %s95_s30  ;;  %p101_p13 = scmp.lt.s32.totalorder %s95_s30, %s95_s30 }
  0x1c   :  { %p102_p0 = por %p101_p13, %p100_p12 }
  0x1e   :  { %p103_p1 = pnand %p102_p0, %p96_p11 }
  0x20   :  { %106 = shalt.err (!%p103_p1)
}
  0x21   :  { %29 = dma.hbm_to_vmem [thread:$0]  %s190_s1, 256, %s27_s12, [#allocation6]  }
  0x22   :  { %129 = dma.done.wait [#allocation3], 256  }
  0x23   :  { %130 = vsyncadd [#allocation3], 4294967040 }
  0x24   :  { %131 = dma.done.wait [#allocation6], 256  }
  0x25   :  { %132 = vsyncadd [#allocation6], 4294967040  ;;  %s137_s4 = smov [#allocation7]   ;;  %v36_v0 = vld [vmem:[#allocation2] sm:$0xff]  ;;  %v38_v1 = vld [vmem:[#allocation5] sm:$0xff] }
  0x26   :  { %s50_s5 = sshll.u32 %s137_s4, 4  ;;  %v37_v2 = vld [vmem:[#allocation2 + $0x8] sm:$0xff]  ;;  %v40_v3 = vadd.f32 %v38_v1, %v36_v0  ;;  %v39_v4 = vld [vmem:[#allocation5 + $0x8] sm:$0xff]  ;;  %s51_s5 = int_to_ptr.vmem [resolvable:$true] %s50_s5 }
  0x27   :  { %v41_v5 = vadd.f32 %v39_v4, %v37_v2  ;;  %s107_s6 = scalar_lea.vmem %s51_s5, 256  ;;  %p112_p3 = scmp.lt.s32.totalorder %s51_s5, %s51_s5 }
  0x28   :  { %42 = vst [vmem:[#allocation7] sm:$0xff] %v40_v3  ;;  %p108_p2 = scmp.ne.s32.totalorder %s51_s5, %s107_s6  ;;  %p113_p4 = scmp.lt.s32.totalorder %s107_s6, %s107_s6 }
  0x29   :  { %43 = vst [vmem:[#allocation7 + $0x8] sm:$0xff] %v41_v5 }
  0x2a   :  { %p114_p5 = por %p113_p4, %p112_p3 }
  0x2c   :  { %p115_p6 = pnand %p114_p5, %p108_p2 }
  0x2e   :  { %118 = shalt.err (!%p115_p6)
}
  0x2f   :  { %s119_s8 = scalar_lea.hbm %s191_s2, 256 }
  0x30   :  { %p120_p7 = scmp.ne.s32.totalorder %s191_s2, %s119_s8  ;;  %p123_p8 = scmp.lt.u32.totalorder %s119_s8, %s191_s2 }
  0x32   :  { %p125_p9 = pnand %p123_p8, %p120_p7 }
  0x34   :  { %128 = shalt.err (!%p125_p9)
}
  0x35   :  { %53 = dma.vmem_to_hbm [thread:$0]  %s51_s5, 256, %s191_s2, [#allocation4]  }
  0x36   :  { %133 = dma.done.wait [#allocation4], 256  }
  0x37   :  { %134 = vsyncadd [#allocation4], 4294967040 }
  0x38   :  { %57 = vsyncpa [#allocation3], 1 }
  0x39   :  { %58 = vsyncpa [#allocation6], 1 }
  0x3a   :  { %59 = vsyncpa [#allocation4], 1 }

</bundles_post_ra>
